<compile_context>
chip_gen: v6e
topology: v6e:2x2x1
jax: 0.10.0
libtpu: 0.0.40
codegen_flags: <defaults>
</compile_context>

<pallas_src>
import functools

import jax
import jax.numpy as jnp
from jax.experimental import pallas as pl
from jax.experimental.pallas import tpu as pltpu

EPS = 1e-6
LANE = 128

_VMEM_LIMIT_CACHE = None


def _vmem_limit_bytes():
    """Scoped-VMEM budget derived from the chip: ~3/4 of physical VMEM,
    capped at 96 MiB (v5e/v6e: 128 MiB -> 96 MiB; v7x: 64 MiB/TC -> 48 MiB)."""
    global _VMEM_LIMIT_CACHE
    if _VMEM_LIMIT_CACHE is None:
        cap = 64 * 1024 * 1024  # conservative fallback
        try:
            cap = int(getattr(pltpu.get_tpu_info(), "vmem_capacity_bytes", cap))
        except Exception:
            pass
        _VMEM_LIMIT_CACHE = max(32 * 1024 * 1024,
                                min(96 * 1024 * 1024, (cap * 3) // 4))
    return _VMEM_LIMIT_CACHE


def _pick_tile(hw, num_classes, itemsize, vmem_limit):
    """HW tile (lane axis): as large as the VMEM budget allows, 128-aligned,
    never exceeding HW (the ragged last block is masked in-kernel), and
    balanced across blocks so the boundary block is not nearly empty."""
    if hw <= LANE:
        return hw  # full-array lane dim (allowed by the (8,128) rule)
    # Per-pixel VMEM bytes: double-buffered logits + int32 targets, plus a
    # generous allowance for the f32 full-tile temporaries (x, e, select, ...).
    per_pixel = 2 * num_classes * itemsize + 2 * 4 + 6 * num_classes * 4
    budget = int(vmem_limit * 0.85)
    max_tile = max(LANE, (budget // per_pixel) // LANE * LANE)
    max_tile = min(max_tile, (hw // LANE) * LANE)   # keep block <= array dim
    nblocks = -(-hw // max_tile)
    tile = -(-(-(-hw // nblocks)) // LANE) * LANE   # balanced, 128-aligned
    return max(LANE, min(tile, max_tile))


def _dice_partial_kernel(x_ref, t_ref, psum_ref, acc_ref, *, hw):
    s = pl.program_id(1)          # HW-split index
    j = pl.program_id(2)          # HW-tile index within the split
    n_j = pl.num_programs(2)

    @pl.when(j == 0)
    def _():
        acc_ref[...] = jnp.zeros_like(acc_ref)

    # Cast after the DMA: HBM traffic stays in the input dtype (e.g. bf16).
    x = x_ref[0].astype(jnp.float32)   # (C, T) logits
    t = t_ref[0]                       # (1, T) int32 labels
    C, T = x.shape

    # Numerically-stable softmax pieces; only the (1, T) target-class
    # numerator row is materialized, never the full C x T softmax.
    m = jnp.max(x, axis=0, keepdims=True)                 # (1, T)
    e = jnp.exp(x - m)                                    # (C, T)
    denom = jnp.sum(e, axis=0, keepdims=True)             # (1, T)
    cls = jax.lax.broadcasted_iota(jnp.int32, (C, T), 0)
    num = jnp.sum(jnp.where(cls == t, e, 0.0), axis=0, keepdims=True)  # (1, T)

    r = pl.reciprocal(denom, approx=True)                 # EUP vrcp (free slot)
    r = r * (2.0 - denom * r)                             # Newton -> ~f32 exact
    picked = num * r                                      # softmax[target] per pixel

    # Mask pixels past HW (ragged boundary block; no wrapper-side padding).
    # Masking the result (not the inputs) keeps any garbage NaN/Inf out.
    base = (s * n_j + j) * T
    idx = base + jax.lax.broadcasted_iota(jnp.int32, (1, T), 1)
    picked = jnp.where(idx < hw, picked, 0.0)

    # One XLU lane-reduce per step into a tiny scalar accumulator (replaces
    # the old (C, tile) f32 accumulator and its per-step load/store stream).
    acc_ref[...] += jnp.sum(picked, axis=1, keepdims=True)

    @pl.when(j == n_j - 1)
    def _():
        psum_ref[...] = jnp.broadcast_to(acc_ref[...], psum_ref.shape)


@jax.jit
def dice_loss(logits, target):
    """logits: (N, C, H, W); target: (N, H, W) integer labels.  Scalar loss.

    Implements the softmax=True forward path of the PyTorch DiceLoss (the
    torch type/device validation raises have no kernel equivalent)."""
    N, C, H, W = logits.shape
    HW = H * W

    vmem_limit = _vmem_limit_bytes()
    itemsize = jnp.dtype(logits.dtype).itemsize
    tile = _pick_tile(HW, C, itemsize, vmem_limit)
    num_tiles = -(-HW // tile)

    # v7x has 2 TensorCores: when the batch alone cannot balance them (N == 1
    # or odd N), split the HW reduction in two and combine in the wrapper.
    hw_splits = 2 if (N % 2 == 1 and num_tiles >= 2 and num_tiles % 2 == 0) else 1
    tiles_per_split = num_tiles // hw_splits

    # Contiguous reshapes only: no padded copy of the logits in HBM.
    x = logits.reshape(N, C, HW)
    t = target.reshape(N, 1, HW).astype(jnp.int32)

    kernel = functools.partial(_dice_partial_kernel, hw=HW)

    per_split = pl.pallas_call(
        kernel,
        out_shape=jax.ShapeDtypeStruct((N, hw_splits, LANE), jnp.float32),
        grid_spec=pltpu.PrefetchScalarGridSpec(
            num_scalar_prefetch=0,
            grid=(N, hw_splits, tiles_per_split),
            in_specs=[
                pl.BlockSpec((1, C, tile),
                             lambda i, s, j: (i, 0, s * tiles_per_split + j)),
                pl.BlockSpec((1, 1, tile),
                             lambda i, s, j: (i, 0, s * tiles_per_split + j)),
            ],
            out_specs=pl.BlockSpec((1, 1, LANE), lambda i, s, j: (i, s, 0)),
            scratch_shapes=[pltpu.VMEM((1, 1), jnp.float32)],
        ),
        compiler_params=pltpu.CompilerParams(
            dimension_semantics=("parallel", "parallel", "arbitrary"),
            vmem_limit_bytes=vmem_limit,
        ),
    )(x, t)

    # Combine per-(sample, split) partial sums and apply the exact identities.
    s_sum = jnp.sum(per_split[:, :, 0], axis=1)            # (N,)
    intersection = s_sum + EPS * HW
    cardinality = HW * (2.0 + EPS * C)
    dice = 2.0 * intersection / (cardinality + EPS)
    return jnp.mean(1.0 - dice)


def _dice_loss_ref(logits, target):
    """Pure-JAX reference mirroring the PyTorch module."""
    N, C, H, W = logits.shape
    soft = jax.nn.softmax(logits.astype(jnp.float32), axis=1)
    onehot = jax.nn.one_hot(target, C, axis=1, dtype=jnp.float32) + EPS
    dims = (1, 2, 3)
    intersection = jnp.sum(soft * onehot, axis=dims)
    cardinality = jnp.sum(soft + onehot, axis=dims)
    dice = 2.0 * intersection / (cardinality + EPS)
    return jnp.mean(1.0 - dice)


if __name__ == "__main__":
    key = jax.random.PRNGKey(0)
    k1, k2, k3, k4 = jax.random.split(key, 4)

    # Primary small case consistent with the module (N, C, H, W).
    N, C, H, W = 2, 4, 16, 16
    logits = jax.random.normal(k1, (N, C, H, W), dtype=jnp.float32)
    target = jax.random.randint(k2, (N, H, W), 0, C, dtype=jnp.int32)

    out = dice_loss(logits, target)
    jax.block_until_ready(out)
    ref = _dice_loss_ref(logits, target)
    assert jnp.allclose(out, ref, atol=1e-5, rtol=1e-5), (out, ref)

    # Ragged-HW path (HW = 200 is not a multiple of 128) + two-way HW split
    # (N == 1) used for v7x two-TensorCore balance.
    N2, C2, H2, W2 = 1, 5, 10, 20
    logits2 = jax.random.normal(k3, (N2, C2, H2, W2), dtype=jnp.float32)
    target2 = jax.random.randint(k4, (N2, H2, W2), 0, C2, dtype=jnp.int32)

    out2 = dice_loss(logits2, target2)
    jax.block_until_ready(out2)
    ref2 = _dice_loss_ref(logits2, target2)
    assert jnp.allclose(out2, ref2, atol=1e-5, rtol=1e-5), (out2, ref2)

    print("KERNEL_OK")
</pallas_src>

<mosaic_0001>
module attributes {stable_mosaic.version = 11 : i64} {
  func.func @_dice_partial_kernel(%arg0: i32, %arg1: i32, %arg2: i32, %arg3: memref<1x4x256xf32, #tpu.memory_space<vmem>>, %arg4: memref<1x1x256xi32, #tpu.memory_space<vmem>>, %arg5: memref<1x1x128xf32, #tpu.memory_space<vmem>>, %arg6: memref<1x1xf32, #tpu.memory_space<vmem>>) attributes {dimension_semantics = [#tpu.dimension_semantics<parallel>, #tpu.dimension_semantics<parallel>, #tpu.dimension_semantics<arbitrary>], iteration_bounds = array<i64: 2, 1, 1>, scalar_prefetch = 0 : i64, scratch_operands = 1 : i64, tpu.core_type = #tpu.core_type<tc>, window_params = [{transform_indices = @transform_0, window_bounds = array<i64: 1, 4, 256>}, {transform_indices = @transform_1, window_bounds = array<i64: 1, 1, 256>}, {transform_indices = @transform_2, window_bounds = array<i64: 1, 1, 128>}]} {
    %c0_i32 = arith.constant 0 : i32
    %0 = arith.cmpi eq, %arg2, %c0_i32 : i32
    %1 = arith.extui %0 : i1 to i32
    %c0_i32_0 = arith.constant 0 : i32
    %2 = arith.cmpi ne, %1, %c0_i32_0 : i32
    scf.if %2 {
      %cst_19 = arith.constant 0.000000e+00 : f32
      %45 = vector.broadcast %cst_19 : f32 to vector<1x1xf32>
      %c0_20 = arith.constant 0 : index
      %c0_21 = arith.constant 0 : index
      %46 = vector.load %arg6[%c0_20, %c0_21] : memref<1x1xf32, #tpu.memory_space<vmem>>, vector<1x1xf32>
      tpu.vector_store %arg6[%c0_20, %c0_21], %45 {strides = array<i32>} : memref<1x1xf32, #tpu.memory_space<vmem>>, vector<1x1xf32>,
    } else {
    }
    %c0 = arith.constant 0 : index
    %c0_1 = arith.constant 0 : index
    %c0_2 = arith.constant 0 : index
    %3 = vector.load %arg3[%c0, %c0_1, %c0_2] : memref<1x4x256xf32, #tpu.memory_space<vmem>>, vector<1x4x256xf32>
    %4 = vector.shape_cast %3 : vector<1x4x256xf32> to vector<4x256xf32>
    %c0_3 = arith.constant 0 : index
    %c0_4 = arith.constant 0 : index
    %c0_5 = arith.constant 0 : index
    %5 = vector.load %arg4[%c0_3, %c0_4, %c0_5] : memref<1x1x256xi32, #tpu.memory_space<vmem>>, vector<1x1x256xi32>
    %6 = vector.shape_cast %5 : vector<1x1x256xi32> to vector<1x256xi32>
    %cst = arith.constant dense<0xFF800000> : vector<256xf32>
    %7 = vector.multi_reduction <maximumf>, %4, %cst [0] : vector<4x256xf32> to vector<256xf32>
    %8 = vector.shape_cast %7 : vector<256xf32> to vector<1x256xf32>
    %9 = vector.broadcast %8 : vector<1x256xf32> to vector<4x256xf32>
    %10 = arith.subf %4, %9 : vector<4x256xf32>
    %11 = math.exp %10 : vector<4x256xf32>
    %cst_6 = arith.constant dense<0.000000e+00> : vector<256xf32>
    %12 = vector.multi_reduction <add>, %11, %cst_6 [0] : vector<4x256xf32> to vector<256xf32>
    %13 = vector.shape_cast %12 : vector<256xf32> to vector<1x256xf32>
    %14 = tpu.iota {dimensions = array<i32: 0>} : vector<4x256xi32>
    %15 = vector.broadcast %6 : vector<1x256xi32> to vector<4x256xi32>
    %16 = arith.cmpi eq, %14, %15 : vector<4x256xi32>
    %cst_7 = arith.constant 0.000000e+00 : f32
    %17 = vector.broadcast %cst_7 : f32 to vector<4x256xf32>
    %18 = arith.select %16, %11, %17 : vector<4x256xi1>, vector<4x256xf32>
    %cst_8 = arith.constant dense<0.000000e+00> : vector<256xf32>
    %19 = vector.multi_reduction <add>, %18, %cst_8 [0] : vector<4x256xf32> to vector<256xf32>
    %20 = vector.shape_cast %19 : vector<256xf32> to vector<1x256xf32>
    %21 = tpu.reciprocal %13 {approx = true} : vector<1x256xf32> -> vector<1x256xf32>
    %22 = arith.mulf %13, %21 : vector<1x256xf32>
    %cst_9 = arith.constant 2.000000e+00 : f32
    %23 = vector.broadcast %cst_9 : f32 to vector<1x256xf32>
    %24 = arith.subf %23, %22 : vector<1x256xf32>
    %25 = arith.mulf %21, %24 : vector<1x256xf32>
    %26 = arith.mulf %20, %25 : vector<1x256xf32>
    %c1_i32 = arith.constant 1 : i32
    %27 = arith.muli %arg1, %c1_i32 : i32
    %28 = arith.addi %27, %arg2 : i32
    %c256_i32 = arith.constant 256 : i32
    %29 = arith.muli %28, %c256_i32 : i32
    %30 = tpu.iota {dimensions = array<i32: 1>} : vector<1x256xi32>
    %31 = vector.broadcast %29 : i32 to vector<1x256xi32>
    %32 = arith.addi %31, %30 : vector<1x256xi32>
    %c256_i32_10 = arith.constant 256 : i32
    %33 = vector.broadcast %c256_i32_10 : i32 to vector<1x256xi32>
    %34 = arith.cmpi slt, %32, %33 : vector<1x256xi32>
    %cst_11 = arith.constant 0.000000e+00 : f32
    %35 = vector.broadcast %cst_11 : f32 to vector<1x256xf32>
    %36 = arith.select %34, %26, %35 : vector<1x256xi1>, vector<1x256xf32>
    %c0_12 = arith.constant 0 : index
    %c0_13 = arith.constant 0 : index
    %37 = vector.load %arg6[%c0_12, %c0_13] : memref<1x1xf32, #tpu.memory_space<vmem>>, vector<1x1xf32>
    %cst_14 = arith.constant dense<0.000000e+00> : vector<1xf32>
    %38 = vector.multi_reduction <add>, %36, %cst_14 [1] : vector<1x256xf32> to vector<1xf32>
    %39 = vector.shape_cast %38 : vector<1xf32> to vector<1x1xf32>
    %40 = arith.addf %37, %39 : vector<1x1xf32>
    %c0_15 = arith.constant 0 : index
    %c0_16 = arith.constant 0 : index
    %41 = vector.load %arg6[%c0_15, %c0_16] : memref<1x1xf32, #tpu.memory_space<vmem>>, vector<1x1xf32>
    tpu.vector_store %arg6[%c0_15, %c0_16], %40 {strides = array<i32>} : memref<1x1xf32, #tpu.memory_space<vmem>>, vector<1x1xf32>,
    %c0_i32_17 = arith.constant 0 : i32
    %42 = arith.cmpi eq, %arg2, %c0_i32_17 : i32
    %43 = arith.extui %42 : i1 to i32
    %c0_i32_18 = arith.constant 0 : i32
    %44 = arith.cmpi ne, %43, %c0_i32_18 : i32
    scf.if %44 {
      %c0_19 = arith.constant 0 : index
      %c0_20 = arith.constant 0 : index
      %45 = vector.load %arg6[%c0_19, %c0_20] : memref<1x1xf32, #tpu.memory_space<vmem>>, vector<1x1xf32>
      %46 = vector.shape_cast %45 : vector<1x1xf32> to vector<1x1x1xf32>
      %47 = vector.broadcast %46 : vector<1x1x1xf32> to vector<1x1x128xf32>
      %c0_21 = arith.constant 0 : index
      %c0_22 = arith.constant 0 : index
      %c0_23 = arith.constant 0 : index
      %48 = vector.load %arg5[%c0_21, %c0_22, %c0_23] : memref<1x1x128xf32, #tpu.memory_space<vmem>>, vector<1x1x128xf32>
      tpu.vector_store %arg5[%c0_21, %c0_22, %c0_23], %47 {strides = array<i32>} : memref<1x1x128xf32, #tpu.memory_space<vmem>>, vector<1x1x128xf32>,
    } else {
    }
    return
  }
  func.func @transform_0(%arg0: i32, %arg1: i32, %arg2: i32) -> (i32, i32, i32) {
    %c1_i32 = arith.constant 1 : i32
    %0 = arith.muli %arg1, %c1_i32 : i32
    %1 = arith.addi %0, %arg2 : i32
    %c0_i32 = arith.constant 0 : i32
    %c0_i32_0 = arith.constant 0 : i32
    return %arg0, %c0_i32, %1 : i32, i32, i32
  }
  func.func @transform_1(%arg0: i32, %arg1: i32, %arg2: i32) -> (i32, i32, i32) {
    %c1_i32 = arith.constant 1 : i32
    %0 = arith.muli %arg1, %c1_i32 : i32
    %1 = arith.addi %0, %arg2 : i32
    %c0_i32 = arith.constant 0 : i32
    %c0_i32_0 = arith.constant 0 : i32
    return %arg0, %c0_i32, %1 : i32, i32, i32
  }
  func.func @transform_2(%arg0: i32, %arg1: i32, %arg2: i32) -> (i32, i32, i32) {
    %c0_i32 = arith.constant 0 : i32
    %c0_i32_0 = arith.constant 0 : i32
    return %arg0, %arg1, %c0_i32 : i32, i32, i32
  }
}

</mosaic_0001>

<bundles_post_ra>
// kernel: dice_loss.1
= control target key start
LH: loop header
LB: loop body
LE: loop exit
PB: predicated region body
PF: predicated region fallthrough
CT: control target
= control target key end

     0   :  { %s526_s9 = smov 0   ;;  %s528_s10 = smov 0   ;;  %s585_s0 = inlined_call_operand.vmem [shape: f32[2,4,256], index: 0, kind: input, shape index: {}]   ;;  %s586_s1 = inlined_call_operand.vmem [shape: s32[2,1,256], index: 1, kind: input, shape index: {}]   ;;  %s587_s2 = inlined_call_operand.vmem [shape: f32[2,1,128], index: 2, kind: output, shape index: {}]  }
   0x1   :  { %s530_s11 = smov 0  }
   0x2 LB: > { %s31_s12 = sadd.s32 1, %s503_s10  ;;  %p444_p0 = scmp.ge.s32.totalorder %s507_s11, 1  ;;  %s507_s11 = sphi %s530_s11, %s12_s11   ;;  %s503_s10 = sphi %s528_s10, %s589_s10   ;;  %s499_s9 = sphi %s526_s9, %s588_s9  }
   0x3   : > { %p33_p1 = scmp.ge.s32.totalorder %s31_s12, 2  ;;  %p164_p2 = scmp.lt.s32.totalorder %s507_s11, 3 }
   0x5   : > { %s591_s12 = smov (%p33_p1, %s31_s12), 0  ;;  %p165_p3 = pnand %p444_p0, %p164_p2 }
   0x6   : > { %p203_p4 = scmp.lt.s32.totalorder (!%p165_p3), %s499_s9, 1 }
   0x7   : > { %168 = sbr.rel (%p165_p3) target bundleno = 365 (0x16d), region = 28 }
   0xc   : > { %vm234_vm0 = vcmask 0   ;;  %v509_v0 = vmov 0.0   ;;  %s593_s9 = smov (!%p203_p4, %s499_s9), 1  ;;  %vm241_vm1 = vcmask 1043456   ;;  %v280_v20 = vlaneseq }
   0xd   : > { %235 = vst.msk [vmem:[#allocation2] sm:$0x1] %vm234_vm0, %v509_v0  ;;  %s450_s13 = sshll.u32 %s593_s9, 3  ;;  %s447_s17 = sshll.u32 %s593_s9, 1 }
   0xe   : > { %s210_s16 = scalar_lea.vmem %s585_s0, %s450_s13  ;;  %v554_v21 = vshrl.u32 %v280_v20, 7  ;;  %s221_s20 = scalar_lea.vmem %s586_s1, %s447_s17 }
   0xf   : > { %v236_v1 = vld [vmem:[%s210_s16] sm:$0xff]  ;;  %s229_s23 = scalar_lea.vmem %s587_s2, %s593_s9 }
  0x10   : > { %v239_v2 = vcombine.high %v236_v1, %v236_v1  ;;  %v242_v3 = vsel %vm241_vm1, %v236_v1, -inf  ;;  %v284_v22 = vsub.s32 0, %v554_v21  ;;  %v237_v23 = vld [vmem:[%s221_s20] sm:$0x3]  ;;  %v288_v24 = vsub.s32 1, %v554_v21 }
  0x11   : > { %v243_v4 = vrot.slane %v242_v3, 4 }
  0x12   : > { %v249_v5 = vsel %vm241_vm1, %v239_v2, -inf  ;;  %v285_v25 = vrot.slane %v237_v23, %v284_v22  ;;  %v289_v26 = vrot.slane %v237_v23, %v288_v24 }
  0x13   : > { %v244_v6 = vmax.f32 %v242_v3, %v243_v4  ;;  %v250_v7 = vrot.slane %v249_v5, 4 }
  0x14   : > { %vm290_vm2 = vcmp.eq.s32.totalorder %v554_v21, %v285_v25  ;;  %vm291_vm3 = vcmp.eq.s32.totalorder %v554_v21, %v289_v26 }
  0x15   : > { %v245_v8 = vrot.slane %v244_v6, 2  ;;  %v251_v9 = vmax.f32 %v249_v5, %v250_v7  ;;  %v330_v7 = vld [vmem:[#allocation2] sm:$0x1] }
  0x17   : > { %v246_v10 = vmax.f32 %v244_v6, %v245_v8  ;;  %v252_v11 = vrot.slane %v251_v9, 2  ;;  %v510_v6 = vmov 0  }
  0x18   : > { %477 = vset.pattern.permute.xlu0 %v510_v6 }
  0x19   : > { %v247_v12 = vrot.slane %v246_v10, 1  ;;  %v253_v13 = vmax.f32 %v251_v9, %v252_v11 }
  0x1b   : > { %v248_v14 = vmax.f32 %v246_v10, %v247_v12  ;;  %v254_v15 = vrot.slane %v253_v13, 1 }
  0x1d   : > { %v255_v16 = vmax.f32 %v253_v13, %v254_v15 }
  0x1f   : > { %v258_v17 = vcombine.low %v248_v14, %v255_v16 }
  0x21   : > { %v260_v18 = vsub.f32 %v236_v1, %v258_v17 }
  0x23   : > { %v261_v19 = vmul.f32 1.442695, %v260_v18 }
  0x25   : > { %479 = vpow2.f32 %v261_v19 }
  0x32   : > { %v480_v27 = vpop.eup %479 }
  0x33   : > { %v264_v28 = vcombine.high %v480_v27, %v480_v27  ;;  %v266_v29 = vsel %vm241_vm1, %v480_v27, 0.0  ;;  %v292_v34 = vsel %vm290_vm2, %v480_v27, 0.0 }
  0x34   : > { %v267_v30 = vrot.slane %v266_v29, 4  ;;  %v294_v38 = vsel %vm241_vm1, %v292_v34, 0.0 }
  0x35   : > { %v273_v31 = vsel %vm241_vm1, %v264_v28, 0.0  ;;  %v293_v37 = vsel %vm291_vm3, %v264_v28, 0.0  ;;  %v295_v44 = vrot.slane %v294_v38, 4 }
  0x36   : > { %v268_v32 = vadd.f32 %v267_v30, %v266_v29  ;;  %v274_v33 = vrot.slane %v273_v31, 4  ;;  %v301_v41 = vsel %vm241_vm1, %v293_v37, 0.0 }
  0x37   : > { %v302_v47 = vrot.slane %v301_v41, 4  ;;  %v296_v49 = vadd.f32 %v295_v44, %v294_v38 }
  0x38   : > { %v269_v35 = vrot.slane %v268_v32, 2  ;;  %v275_v36 = vadd.f32 %v274_v33, %v273_v31 }
  0x39   : > { %v303_v50 = vadd.f32 %v302_v47, %v301_v41  ;;  %v297_v51 = vrot.slane %v296_v49, 2 }
  0x3a   : > { %v270_v39 = vadd.f32 %v269_v35, %v268_v32  ;;  %v276_v40 = vrot.slane %v275_v36, 2 }
  0x3b   : > { %v304_v52 = vrot.slane %v303_v50, 2  ;;  %v298_v53 = vadd.f32 %v297_v51, %v296_v49 }
  0x3c   : > { %v271_v42 = vrot.slane %v270_v39, 1  ;;  %v277_v43 = vadd.f32 %v276_v40, %v275_v36 }
  0x3d   : > { %v305_v54 = vadd.f32 %v304_v52, %v303_v50  ;;  %v299_v55 = vrot.slane %v298_v53, 1 }
  0x3e   : > { %v272_v45 = vadd.f32 %v271_v42, %v270_v39  ;;  %v278_v46 = vrot.slane %v277_v43, 1 }
  0x3f   : > { %v306_v57 = vrot.slane %v305_v54, 1  ;;  %v300_v60 = vadd.f32 %v299_v55, %v298_v53 }
  0x40   : > { %v279_v48 = vadd.f32 %v278_v46, %v277_v43  ;;  %481 = vrcp.f32 %v272_v45 }
  0x41   : > { %v307_v63 = vadd.f32 %v306_v57, %v305_v54 }
  0x42   : > { %483 = vrcp.f32 %v279_v48 }
  0x4d   : > { %v482_v56 = vpop.eup %481 }
  0x4e   : > { %v310_v58 = vmul.f32 %v482_v56, %v272_v45 }
  0x4f   : > { %v484_v59 = vpop.eup %483 }
  0x50   : > { %v311_v61 = vmul.f32 %v484_v59, %v279_v48  ;;  %v312_v62 = vsub.f32 2.0, %v310_v58 }
  0x52   : > { %v313_v0 = vsub.f32 2.0, %v311_v61  ;;  %v314_v1 = vmul.f32 %v482_v56, %v312_v62 }
  0x54   : > { %v315_v2 = vmul.f32 %v484_v59, %v313_v0  ;;  %v316_v3 = vmul.f32 %v314_v1, %v300_v60 }
  0x56   : > { %v317_v4 = vmul.f32 %v315_v2, %v307_v63 }
  0x58   : > { %v331_v5 = vadd.f32 %v317_v4, %v316_v3 }
  0x5a   : > { %332 = vadd.xlane.f32.xlu0 %v331_v5 }
  0xe3   : > { %v333_v8 = vpop.xlane.xlu0 %332 }
  0xe4   : > { %v334_v9 = vadd.f32 %v333_v8, %v330_v7 }
  0xe6   : > { %336 = vst.msk [vmem:[#allocation2] sm:$0x1] %vm234_vm0, %v334_v9 }
  0xed   : > { %v340_v10 = vld [vmem:[#allocation2] sm:$0x1] }
  0xee   : > { %343 = vperm.xlu0 %477, %v340_v10  }
 0x169   : > { %v344_v11 = vpop.permute.xlu0 %343 }
 0x16a   : > { %v349_v12 = vrot.slane %v344_v11, %v284_v22 }
 0x16c   : > { %350 = vst [vmem:[%s229_s23] sm:$0x1] %v349_v12 }
 0x16d PF: > { %s12_s11 = sadd.s32 1, %s507_s11   ;;  %s588_s9 = smov %s503_s10 }
 0x16e   : > { %p9_p5 = scmp.ge.s32.totalorder %s12_s11, 4   ;;  %s589_s10 = smov %s591_s12 }
 0x170   :  { %11 = sbr.rel (!%p9_p5) target bundleno = 2 (0x2), region = 69 }

</bundles_post_ra>
